<compile_context>
chip_gen: v5e
topology: v5e:2x2
jax: 0.10.0
libtpu: 0.0.40
codegen_flags: <defaults>
</compile_context>

<pallas_src>
import functools

import jax
import jax.numpy as jnp
from jax import lax
from jax.experimental import pallas as pl
from jax.experimental.pallas import tpu as pltpu

EPS = 1e-5
NEG_SLOPE = 0.2


def _round_up(x, m):
    return (x + m - 1) // m * m


def _unet_down_kernel(x_ref, w_ref, mask_ref, o_ref, *, w_half, lp, inv_count):
    # x_ref:    (4*C_in, Pf)     bf16/f32  flattened stride-2 phases of the zero-padded input
    # w_ref:    (4, Ct, 4*C_in)  bf16/f32  conv weights, one (Ct, 4*C_in) matrix per 2x2 offset
    # mask_ref: (1, Lp)          f32       1.0 on valid spatial lanes, 0.0 on fat/pad lanes
    # o_ref:    (Ct, Lp)         f32       normalized + LeakyReLU output (lane-dense spatial axis)
    y = None
    for r0 in range(2):
        for c0 in range(2):
            off = r0 * 2 + c0                 # which (Ct, 4*C_in) weight slab
            s = r0 * w_half + c0              # static lane offset into the flat phase array
            part = jnp.dot(w_ref[off], x_ref[:, s:s + lp],
                           preferred_element_type=jnp.float32)     # MXU, f32 accumulate
            y = part if y is None else y + part

    # InstanceNorm2d (no affine, biased variance) over valid spatial lanes only.
    mask = mask_ref[...]
    mean = jnp.sum(y * mask, axis=1, keepdims=True) * inv_count
    centered = y - mean
    var = jnp.sum(centered * centered * mask, axis=1, keepdims=True) * inv_count
    y_norm = centered * lax.rsqrt(var + EPS)

    # LeakyReLU(0.2).  Garbage (masked) lanes are written too but sliced away in the wrapper.
    o_ref[...] = jnp.where(y_norm > 0, y_norm, NEG_SLOPE * y_norm)


def unet_down(x, weight, bias=None, *, compute_dtype=jnp.bfloat16):
    """x: (N, C_in, H, W) f32; weight: (C_out, C_in, 4, 4); bias is ignored (cancelled by
    InstanceNorm(affine=False)).  Returns (N, C_out, H//2, W//2) f32."""
    del bias  # per-channel constant bias is a no-op under InstanceNorm without affine
    n, cin, h, w = x.shape
    cout = weight.shape[0]
    if h % 2 or w % 2:
        raise ValueError("unet_down expects even H and W for k=4, s=2, p=1.")
    h_out, w_out = h // 2, w // 2
    h_half, w_half = h_out + 1, w_out + 1        # phase-grid extents of the padded input
    k4 = 4 * cin                                 # contraction dim: 4 phases x C_in
    l_fat = h_out * w_half                       # "fat" spatial length (1 garbage lane per row)
    lp = _round_up(l_fat, 128)                   # lane-dense compute/output width
    pf = _round_up(lp + w_half + 1, 128)         # padded flat input width (covers all 4 offsets)

    # ---- pad + stride-2 space-to-depth (pure permutation, no im2col duplication) ------------
    xp = jnp.pad(x, ((0, 0), (0, 0), (1, 1), (1, 1)))
    # (N, C, 2*H_half, 2*W_half) -> (N, a, b, C, H_half, W_half) with a/b = row/col parity
    xph = xp.reshape(n, cin, h_half, 2, w_half, 2).transpose(0, 3, 5, 1, 2, 4)
    x_flat = xph.reshape(n, k4, h_half * w_half)
    x_flat = jnp.pad(x_flat, ((0, 0), (0, 0), (0, pf - h_half * w_half)))
    x_flat = x_flat.astype(compute_dtype)

    # ---- weights: (C_out, C_in, 4, 4) -> (4 offsets, C_out, 4*C_in), rows ordered (a, b, c) --
    w_r = weight.reshape(cout, cin, 2, 2, 2, 2).transpose(2, 4, 0, 3, 5, 1)
    w_mat = w_r.reshape(4, cout, k4).astype(compute_dtype)

    # ---- validity mask over the fat lane axis (built outside the kernel) ---------------------
    cols = jnp.arange(lp, dtype=jnp.int32)
    valid = (cols < l_fat) & ((cols % w_half) < w_out)
    mask = valid.astype(jnp.float32).reshape(1, lp)

    c_tile = 128 if (cout > 128 and cout % 128 == 0) else cout
    grid = (n, cout // c_tile)

    kernel = functools.partial(_unet_down_kernel, w_half=w_half, lp=lp,
                               inv_count=1.0 / float(h_out * w_out))

    # TODO(synk): for very large spatial layers, tile the lane (spatial) axis and switch to a
    # two-pass InstanceNorm (fp32 sum / sum-of-squares accumulators) to stay inside v7x's 64 MiB VMEM.
    out = pl.pallas_call(
        kernel,
        out_shape=jax.ShapeDtypeStruct((n, cout, lp), jnp.float32),
        grid_spec=pltpu.PrefetchScalarGridSpec(
            num_scalar_prefetch=0,
            grid=grid,
            in_specs=[
                pl.BlockSpec((None, k4, pf), lambda b, j: (b, 0, 0)),     # phases (batch-squeezed)
                pl.BlockSpec((4, c_tile, k4), lambda b, j: (0, j, 0)),    # weights (C_out-tiled)
                pl.BlockSpec((1, lp), lambda b, j: (0, 0)),               # lane-validity mask
            ],
            out_specs=pl.BlockSpec((None, c_tile, lp), lambda b, j: (b, j, 0)),
        ),
        compiler_params=pltpu.CompilerParams(
            dimension_semantics=("parallel", "parallel"),
            vmem_limit_bytes=64 * 1024 * 1024,
        ),
    )(x_flat, w_mat, mask)

    # Drop the fat/garbage lanes; result is already channel-major -> plain reshape to NCHW.
    out = out[:, :, :l_fat].reshape(n, cout, h_out, w_half)[:, :, :, :w_out]
    return out


def _reference(x, weight, bias, *, compute_dtype=jnp.bfloat16):
    # Reference uses the same input quantization as the kernel path so the comparison isolates
    # the kernel math (conv + InstanceNorm + LeakyReLU) rather than the bf16 input rounding.
    xq = x.astype(compute_dtype).astype(jnp.float32)
    wq = weight.astype(compute_dtype).astype(jnp.float32)
    y = lax.conv_general_dilated(
        xq, wq, window_strides=(2, 2), padding=((1, 1), (1, 1)),
        dimension_numbers=("NCHW", "OIHW", "NCHW"),
        precision=lax.Precision.HIGHEST)
    y = y + bias.reshape(1, -1, 1, 1)   # cancelled by InstanceNorm; kept to mirror the module
    mean = jnp.mean(y, axis=(2, 3), keepdims=True)
    var = jnp.mean((y - mean) ** 2, axis=(2, 3), keepdims=True)
    yn = (y - mean) * lax.rsqrt(var + EPS)
    return jnp.where(yn > 0, yn, NEG_SLOPE * yn)


if __name__ == "__main__":
    key = jax.random.PRNGKey(0)
    kx, kw, kb = jax.random.split(key, 3)

    N, C_IN, C_OUT, H, W = 2, 4, 8, 16, 16
    x = jax.random.normal(kx, (N, C_IN, H, W), dtype=jnp.float32)
    weight = 0.1 * jax.random.normal(kw, (C_OUT, C_IN, 4, 4), dtype=jnp.float32)
    bias = 0.1 * jax.random.normal(kb, (C_OUT,), dtype=jnp.float32)

    out = jax.block_until_ready(unet_down(x, weight, bias))
    ref = jax.block_until_ready(_reference(x, weight, bias))

    assert out.shape == (N, C_OUT, H // 2, W // 2), out.shape
    max_err = float(jnp.max(jnp.abs(out - ref)))
    assert jnp.allclose(out, ref, rtol=1e-3, atol=1e-3), max_err
    print("KERNEL_OK")
</pallas_src>

<mosaic_0001>
module attributes {stable_mosaic.version = 11 : i64} {
  func.func @_unet_down_kernel(%arg0: i32, %arg1: i32, %arg2: memref<1x16x256xbf16, #tpu.memory_space<vmem>>, %arg3: memref<4x8x16xbf16, #tpu.memory_space<vmem>>, %arg4: memref<1x128xf32, #tpu.memory_space<vmem>>, %arg5: memref<1x8x128xf32, #tpu.memory_space<vmem>>) attributes {dimension_semantics = [#tpu.dimension_semantics<parallel>, #tpu.dimension_semantics<parallel>], iteration_bounds = array<i64: 2, 1>, scalar_prefetch = 0 : i64, scratch_operands = 0 : i64, tpu.core_type = #tpu.core_type<tc>, window_params = [{transform_indices = @transform_0, window_bounds = array<i64: 1, 16, 256>}, {transform_indices = @transform_1, window_bounds = array<i64: 4, 8, 16>}, {pipeline_mode = #tpu.pipeline_mode<synchronous>, transform_indices = @transform_2, window_bounds = array<i64: 1, 128>}, {transform_indices = @transform_3, window_bounds = array<i64: 1, 8, 128>}]} {
    %c0 = arith.constant 0 : index
    %c0_0 = arith.constant 0 : index
    %c0_1 = arith.constant 0 : index
    %0 = vector.load %arg3[%c0, %c0_0, %c0_1] : memref<4x8x16xbf16, #tpu.memory_space<vmem>>, vector<1x8x16xbf16>
    %1 = vector.shape_cast %0 : vector<1x8x16xbf16> to vector<8x16xbf16>
    %c0_2 = arith.constant 0 : index
    %c0_3 = arith.constant 0 : index
    %c0_4 = arith.constant 0 : index
    %2 = vector.load %arg2[%c0_2, %c0_3, %c0_4] : memref<1x16x256xbf16, #tpu.memory_space<vmem>>, vector<1x16x128xbf16>
    %3 = vector.shape_cast %2 : vector<1x16x128xbf16> to vector<16x128xbf16>
    %cst = arith.constant dense<0.000000e+00> : vector<8x128xf32>
    %4 = tpu.matmul %1, %3, %cst {dimension_numbers = #tpu.dot_dimension_numbers<[1], [0], [0], [1], [0, 0, 1, 1], [], []>} : vector<8x16xbf16>, vector<16x128xbf16>, vector<8x128xf32> -> vector<8x128xf32>
    %c1 = arith.constant 1 : index
    %c0_5 = arith.constant 0 : index
    %c0_6 = arith.constant 0 : index
    %5 = vector.load %arg3[%c1, %c0_5, %c0_6] : memref<4x8x16xbf16, #tpu.memory_space<vmem>>, vector<1x8x16xbf16>
    %6 = vector.shape_cast %5 : vector<1x8x16xbf16> to vector<8x16xbf16>
    %c0_7 = arith.constant 0 : index
    %c0_8 = arith.constant 0 : index
    %c1_9 = arith.constant 1 : index
    %7 = vector.load %arg2[%c0_7, %c0_8, %c1_9] : memref<1x16x256xbf16, #tpu.memory_space<vmem>>, vector<1x16x128xbf16>
    %8 = vector.shape_cast %7 : vector<1x16x128xbf16> to vector<16x128xbf16>
    %cst_10 = arith.constant dense<0.000000e+00> : vector<8x128xf32>
    %9 = tpu.matmul %6, %8, %cst_10 {dimension_numbers = #tpu.dot_dimension_numbers<[1], [0], [0], [1], [0, 0, 1, 1], [], []>} : vector<8x16xbf16>, vector<16x128xbf16>, vector<8x128xf32> -> vector<8x128xf32>
    %10 = arith.addf %4, %9 : vector<8x128xf32>
    %c2 = arith.constant 2 : index
    %c0_11 = arith.constant 0 : index
    %c0_12 = arith.constant 0 : index
    %11 = vector.load %arg3[%c2, %c0_11, %c0_12] : memref<4x8x16xbf16, #tpu.memory_space<vmem>>, vector<1x8x16xbf16>
    %12 = vector.shape_cast %11 : vector<1x8x16xbf16> to vector<8x16xbf16>
    %c0_13 = arith.constant 0 : index
    %c0_14 = arith.constant 0 : index
    %c9 = arith.constant 9 : index
    %13 = vector.load %arg2[%c0_13, %c0_14, %c9] : memref<1x16x256xbf16, #tpu.memory_space<vmem>>, vector<1x16x128xbf16>
    %14 = vector.shape_cast %13 : vector<1x16x128xbf16> to vector<16x128xbf16>
    %cst_15 = arith.constant dense<0.000000e+00> : vector<8x128xf32>
    %15 = tpu.matmul %12, %14, %cst_15 {dimension_numbers = #tpu.dot_dimension_numbers<[1], [0], [0], [1], [0, 0, 1, 1], [], []>} : vector<8x16xbf16>, vector<16x128xbf16>, vector<8x128xf32> -> vector<8x128xf32>
    %16 = arith.addf %10, %15 : vector<8x128xf32>
    %c3 = arith.constant 3 : index
    %c0_16 = arith.constant 0 : index
    %c0_17 = arith.constant 0 : index
    %17 = vector.load %arg3[%c3, %c0_16, %c0_17] : memref<4x8x16xbf16, #tpu.memory_space<vmem>>, vector<1x8x16xbf16>
    %18 = vector.shape_cast %17 : vector<1x8x16xbf16> to vector<8x16xbf16>
    %c0_18 = arith.constant 0 : index
    %c0_19 = arith.constant 0 : index
    %c10 = arith.constant 10 : index
    %19 = vector.load %arg2[%c0_18, %c0_19, %c10] : memref<1x16x256xbf16, #tpu.memory_space<vmem>>, vector<1x16x128xbf16>
    %20 = vector.shape_cast %19 : vector<1x16x128xbf16> to vector<16x128xbf16>
    %cst_20 = arith.constant dense<0.000000e+00> : vector<8x128xf32>
    %21 = tpu.matmul %18, %20, %cst_20 {dimension_numbers = #tpu.dot_dimension_numbers<[1], [0], [0], [1], [0, 0, 1, 1], [], []>} : vector<8x16xbf16>, vector<16x128xbf16>, vector<8x128xf32> -> vector<8x128xf32>
    %22 = arith.addf %16, %21 : vector<8x128xf32>
    %c0_21 = arith.constant 0 : index
    %c0_22 = arith.constant 0 : index
    %23 = vector.load %arg4[%c0_21, %c0_22] : memref<1x128xf32, #tpu.memory_space<vmem>>, vector<1x128xf32>
    %24 = vector.broadcast %23 : vector<1x128xf32> to vector<8x128xf32>
    %25 = arith.mulf %22, %24 : vector<8x128xf32>
    %cst_23 = arith.constant dense<0.000000e+00> : vector<8xf32>
    %26 = vector.multi_reduction <add>, %25, %cst_23 [1] : vector<8x128xf32> to vector<8xf32>
    %27 = vector.shape_cast %26 : vector<8xf32> to vector<8x1xf32>
    %cst_24 = arith.constant 1.562500e-02 : f32
    %28 = vector.broadcast %cst_24 : f32 to vector<8x1xf32>
    %29 = arith.mulf %27, %28 : vector<8x1xf32>
    %30 = vector.broadcast %29 : vector<8x1xf32> to vector<8x128xf32>
    %31 = arith.subf %22, %30 : vector<8x128xf32>
    %32 = arith.mulf %31, %31 : vector<8x128xf32>
    %33 = vector.broadcast %23 : vector<1x128xf32> to vector<8x128xf32>
    %34 = arith.mulf %32, %33 : vector<8x128xf32>
    %cst_25 = arith.constant dense<0.000000e+00> : vector<8xf32>
    %35 = vector.multi_reduction <add>, %34, %cst_25 [1] : vector<8x128xf32> to vector<8xf32>
    %36 = vector.shape_cast %35 : vector<8xf32> to vector<8x1xf32>
    %cst_26 = arith.constant 1.562500e-02 : f32
    %37 = vector.broadcast %cst_26 : f32 to vector<8x1xf32>
    %38 = arith.mulf %36, %37 : vector<8x1xf32>
    %cst_27 = arith.constant 9.99999974E-6 : f32
    %39 = vector.broadcast %cst_27 : f32 to vector<8x1xf32>
    %40 = arith.addf %38, %39 : vector<8x1xf32>
    %41 = math.rsqrt %40 : vector<8x1xf32>
    %42 = vector.broadcast %41 : vector<8x1xf32> to vector<8x128xf32>
    %43 = arith.mulf %31, %42 : vector<8x128xf32>
    %cst_28 = arith.constant 0.000000e+00 : f32
    %44 = vector.broadcast %cst_28 : f32 to vector<8x128xf32>
    %45 = arith.cmpf ogt, %43, %44 : vector<8x128xf32>
    %cst_29 = arith.constant 2.000000e-01 : f32
    %46 = vector.broadcast %cst_29 : f32 to vector<8x128xf32>
    %47 = arith.mulf %46, %43 : vector<8x128xf32>
    %48 = arith.select %45, %43, %47 : vector<8x128xi1>, vector<8x128xf32>
    %c0_30 = arith.constant 0 : index
    %c0_31 = arith.constant 0 : index
    %c0_32 = arith.constant 0 : index
    %49 = vector.load %arg5[%c0_30, %c0_31, %c0_32] : memref<1x8x128xf32, #tpu.memory_space<vmem>>, vector<1x8x128xf32>
    %50 = vector.shape_cast %49 : vector<1x8x128xf32> to vector<8x128xf32>
    %51 = vector.shape_cast %48 : vector<8x128xf32> to vector<1x8x128xf32>
    tpu.vector_store %arg5[%c0_30, %c0_31, %c0_32], %51 {strides = array<i32>} : memref<1x8x128xf32, #tpu.memory_space<vmem>>, vector<1x8x128xf32>,
    return
  }
  func.func @transform_0(%arg0: i32, %arg1: i32) -> (i32, i32, i32) {
    %c0_i32 = arith.constant 0 : i32
    %c0_i32_0 = arith.constant 0 : i32
    %c0_i32_1 = arith.constant 0 : i32
    return %arg0, %c0_i32, %c0_i32_0 : i32, i32, i32
  }
  func.func @transform_1(%arg0: i32, %arg1: i32) -> (i32, i32, i32) {
    %c0_i32 = arith.constant 0 : i32
    %c0_i32_0 = arith.constant 0 : i32
    %c0_i32_1 = arith.constant 0 : i32
    return %c0_i32, %arg1, %c0_i32_0 : i32, i32, i32
  }
  func.func @transform_2(%arg0: i32, %arg1: i32) -> (i32, i32) {
    %c0_i32 = arith.constant 0 : i32
    %c0_i32_0 = arith.constant 0 : i32
    %c0_i32_1 = arith.constant 0 : i32
    return %c0_i32, %c0_i32_0 : i32, i32
  }
  func.func @transform_3(%arg0: i32, %arg1: i32) -> (i32, i32, i32) {
    %c0_i32 = arith.constant 0 : i32
    %c0_i32_0 = arith.constant 0 : i32
    return %arg0, %arg1, %c0_i32 : i32, i32, i32
  }
}

</mosaic_0001>

<bundles_post_ra>
// kernel: tpu_custom_call.1
= control target key start
LH: loop header
LB: loop body
LE: loop exit
PB: predicated region body
PF: predicated region fallthrough
CT: control target
= control target key end

     0   :  { %s933_s0 = inlined_call_operand.hbm [shape: bf16[2,16,256], index: 0, kind: input, shape index: {}]   ;;  %s934_s1 = inlined_call_operand.hbm [shape: bf16[4,8,16], index: 1, kind: input, shape index: {}]   ;;  %s935_s2 = inlined_call_operand.vmem [shape: f32[1,128], index: 2, kind: input, shape index: {}]   ;;  %s936_s3 = inlined_call_operand.hbm [shape: f32[2,8,128], index: 3, kind: output, shape index: {}]  }
   0x1   :  { %937 = sst [smem:[#allocation11_spill]] %s934_s1 }
   0x2   :  { %8 = vsyncpa [#allocation3], 0 }
   0x3   :  { %10 = vsyncpa [#allocation3 + $0x1], 0 }
   0x4   :  { %11 = vsyncpa [#allocation6], 0 }
   0x5   :  { %12 = vsyncpa [#allocation4], 0 }
   0x6   :  { %14 = vsyncpa [#allocation4 + $0x1], 0  ;;  %s776_s12 = smov 0   ;;  %s778_s13 = smov 0  }
   0x7   :  { %s780_s14 = smov 0   ;;  %s782_s15 = smov 0  }
   0x8   :  { %s784_s16 = smov 0   ;;  %s786_s17 = smov 0  }
   0x9 LB: > { %s481_s18 = sadd.s32 4294967295, %s746_s17   ;;  %s482_s19 = sadd.s32 4294967294, %s746_s17   ;;  %s746_s17 = sphi %s786_s17, %s20_s17   ;;  %s742_s16 = sphi %s784_s16, %s950_s16   ;;  %s738_s15 = sphi %s782_s15, %s949_s15   ;;  %s734_s14 = sphi %s780_s14, %s948_s14   ;;  %s730_s13 = sphi %s778_s13, %s947_s13   ;;  %s726_s12 = sphi %s776_s12, %s946_s12  }
   0xa   : > { %p52_p0 = scmp.ne.s32.totalorder %s730_s13, %s726_s12  ;;  %p810_p1 = scmp.eq.s32.totalorder %s481_s18, 0 }
   0xb   : > { %p814_p2 = scmp.eq.s32.totalorder %s481_s18, 1  ;;  %p131_p3 = scmp.eq.s32.totalorder %s482_s19, 1 }
   0xc   : > { %p820_p4 = por %p810_p1, %p52_p0  ;;  %p483_p5 = scmp.ge.s32.totalorder %s746_s17, 1 }
   0xd   : > { %p825_p6 = por %p131_p3, %p52_p0  ;;  %p138_p7 = scmp.lt.s32.totalorder %s746_s17, 3 }
   0xe   : > { %s942_s1 = sld [smem:[#allocation11_spill]]  ;;  %s748_s28 = smov [#allocation5]  }
   0xf   : > { %p833_p8 = pnand %p483_p5, %p138_p7  ;;  %s153_s29 = sshll.u32 %s748_s28, 4  ;;  %s154_s29 = int_to_ptr.vmem [resolvable:$true] %s153_s29 }
  0x10   : > { %p485_p11 = scmp.ge.s32.totalorder %s746_s17, 2  ;;  %s749_s30 = smov 64  }
  0x11   : > { %p525_p9 = pneg %p833_p8  ;;  %s750_s4 = smov 4  }
  0x12   : > { %s32_s5 = sadd.s32 1, %s742_s16  ;;  %s39_s6 = sadd.s32 1, %s734_s14 }
  0x13   : > { %p526_p10 = pnand %p525_p9, %p810_p1  ;;  %p34_p12 = scmp.ge.s32.totalorder %s32_s5, 2 }
  0x14   : > { %s151_s26 = sshll.u32 %s942_s1, 4  ;;  %p46_p13 = scmp.ne.s32.totalorder %s734_s14, %s730_s13  ;;  %s152_s26 = int_to_ptr.hbm [resolvable:$true] %s151_s26 }
  0x15   : > { %528 = dma.hbm_to_vmem [thread:$0]  (!%p526_p10), %s152_s26, 256, %s154_s29, [#allocation6], %s749_s30, %s749_s30, %s750_s4  }
  0x16   : > { %p47_p0 = scmp.eq.s32.totalorder %s746_s17, 0  ;;  %s952_s5 = smov (%p34_p12, %s32_s5), 0 }
  0x17   : > { %p855_p5 = por %p814_p2, %p46_p13  ;;  %s36_s9 = ssub.s32 %s742_s16, %s952_s5 }
  0x18   : > { %p849_p3 = por %p47_p0, %p46_p13  ;;  %p538_p7 = scmp.lt.s32.totalorder %s746_s17, 2 }
  0x19   : > { %p37_p9 = scmp.eq.s32.totalorder %s36_s9, 0  ;;  %s170_s10 = sand.u32 1, %s734_s14  }
  0x1a   : > { %s486_s11 = sshll.u32 %s170_s10, 4  ;;  %s513_s19 = sshll.u32 %s742_s16, 4 }
  0x1b   : > { %s864_s18 = scalar_select %p37_p9, %s734_s14, %s39_s6  }
  0x1c   : > { %s179_s26 = scalar_lea.hbm %s933_s0, %s513_s19  ;;  %s174_s28 = scalar_lea.vmem [#allocation2], %s486_s11 }
  0x1d   : > { %s182_s29 = sshll.u32 %s174_s28, 4  ;;  %s180_s21 = sshll.u32 %s179_s26, 4  ;;  %s183_s29 = int_to_ptr.vmem [resolvable:$true] %s182_s29  ;;  %s181_s21 = int_to_ptr.hbm [resolvable:$true] %s180_s21 }
  0x1e   : > { %p530_p2 = pnand %p538_p7, %p849_p3  ;;  %s171_s30 = scalar_lea.sflag [#allocation3], %s170_s10 }
  0x1f   : > { %s751_s4 = smov 128   ;;  %s752_s1 = smov 8  }
  0x20   : > { %532 = dma.hbm_to_vmem [thread:$0]  (!%p530_p2), %s181_s21, 256, %s183_s29, %s171_s30, %s751_s4, %s751_s4, %s752_s1  }
  0x21   : > { %194 = sbr.rel (%p833_p8) target bundleno = 579 (0x243), region = 32  ;;  %s875_s6 = sand.u32 (!%p833_p8), 1, %s730_s13  }
  0x22   : > { %s490_s9 = sshll.u32 (!%p833_p8), %s875_s6, 4  ;;  %s197_s11 = scalar_lea.sflag (!%p833_p8), [#allocation3], %s875_s6 }
  0x23   : > { %s200_s19 = scalar_lea.vmem (!%p833_p8), [#allocation2], %s490_s9 }
  0x26   : > { %713 = dma.done.wait (%p820_p4), %s197_s11, 256  }
  0x27   : > { %715 = vsyncadd (%p820_p4), %s197_s11, 4294967040 }
  0x28   : > { %717 = dma.done.wait (%p810_p1), [#allocation6], 256  }
  0x29   : > { %719 = vsyncadd (%p810_p1), [#allocation6], 4294967040  ;;  %v495_v0 = vld [vmem:[%s200_s19] sm:$0xf]  ;;  %v516_v1 = vld [vmem:[%s200_s19 + $0x4] sm:$0xf0] }
  0x2a   : > { %v496_v2 = vor.u32 %v516_v1, %v495_v0  ;;  %s753_s1 = smov 118   ;;  %s754_s27 = smov 119   ;;  %v515_v3 = vld [vmem:[%s200_s19 + $0x4] sm:$0xf]  ;;  %v497_v4 = vld [vmem:[%s200_s19 + $0x8] sm:$0xf0] }
  0x2b   : > { %s755_s7 = smov 127   ;;  %v500_v5 = vor.u32 %v515_v3, %v497_v4  ;;  %v504_v6 = vld [vmem:[%s200_s19] sm:$0xf]  ;;  %v514_v7 = vld [vmem:[%s200_s19 + $0x4] sm:$0xf0]  ;;  %vm252_vm0 = vcmask 130048  }
  0x2c   : > { %319 = vrot.lane.b32.xlu1 %v496_v2, %s753_s1  ;;  %293 = vrot.lane.b32.xlu0 %v496_v2, %s754_s27  ;;  %v505_v8 = vor.u32 %v514_v7, %v504_v6  ;;  %v230_v9 = vld [vmem:[#allocation5] sm:$0xf]  ;;  %vm249_vm1 = vcmask 1039360   ;;  %v234_v13 = vld [vmem:[#allocation5 + $0x4] sm:$0xf]  ;;  %vm297_vm2 = vcmask 973824  }
  0x2d   : > { %245 = vrot.lane.b32.xlu2 %v496_v2, %s755_s7  ;;  %vm323_vm3 = vcmask 965632   ;;  %v292_v20 = vld [vmem:[#allocation5 + $0x8] sm:$0xf]  ;;  %v318_v21 = vld [vmem:[#allocation5 + $0xc] sm:$0xf]  ;;  %s492_s10 = sshll.u32 %s875_s6, 3 }
  0x2e   : > { %285 = vmatpush.bf16.msra.mxu1 %v505_v8  ;;  %v597_v30 = vld [vmem:[%s935_s2] ss:$0 sm:$0xff]  ;;  %s510_s24 = sshll.u32 %s738_s15, 3  ;;  %s228_s29 = scalar_lea.vmem [#allocation7], %s492_s10 }
  0x2f   : > { %s385_s28 = scalar_lea.hbm %s936_s3, %s510_s24  ;;  %s387_s21 = sshll.u32 %s228_s29, 4  ;;  %s388_s21 = int_to_ptr.vmem [resolvable:$true] %s387_s21 }
  0x30   : > { %s389_s30 = sshll.u32 %s385_s28, 4  ;;  %s374_s15 = scalar_lea.sflag [#allocation4], %s875_s6  ;;  %s390_s30 = int_to_ptr.hbm [resolvable:$true] %s389_s30 }
  0x31   : > { %506 = vmatmul.msk.bf16.vlgmr.msra.gmra.mxu1 %vm252_vm0, %v230_v9  ;;  %s674_s4 = sshra.s32 %s390_s30, 4  ;;  %s675_s4 = int_to_ptr.hbm [resolvable:$true] %s674_s4 }
  0x32   : > { %s676_s9 = scalar_lea.hbm %s675_s4, 8  ;;  %p681_p10 = scmp.lt.s32.totalorder %s675_s4, %s936_s3 }
  0x33   : > { %p677_p1 = scmp.ne.s32.totalorder %s675_s4, %s676_s9 }
  0x34   : > { %321 = vrot.lane.b32.xlu1 %v500_v5, %s753_s1  ;;  %295 = vrot.lane.b32.xlu0 %v500_v5, %s754_s27  ;;  %s680_s1 = scalar_lea.hbm %s936_s3, 16 }
  0x35   : > { %247 = vrot.lane.b32.xlu2 %v500_v5, %s755_s7  ;;  %p678_p4 = pnand %p677_p1, %p855_p5  ;;  %p682_p12 = scmp.lt.s32.totalorder %s680_s1, %s676_s9 }
  0x37   : > { %p679_p8 = pneg %p678_p4  ;;  %p683_p13 = por %p682_p12, %p681_p10 }
  0x39   : > { %p684_p0 = pnand %p683_p13, %p679_p8 }
  0x87   : > { %v246_v10 = vpop.permute.xlu2 %245 }
  0x8f   : > { %v248_v11 = vpop.permute.xlu2 %247 }
  0x90   : > { %v250_v12 = vsel %vm249_vm1, %v246_v10, %v248_v11 }
  0x91   : > { %263 = vmatpush.bf16.msra.mxu0 %v250_v12 }
  0x94   : > { %501 = vmatmul.msk.bf16.vlgmr.msra.gmra.mxu0 %vm252_vm0, %v234_v13 }
  0x9e   : > { %v320_v14 = vpop.permute.xlu1 %319  ;;  %v294_v15 = vpop.permute.xlu0 %293 }
  0xa6   : > { %v322_v16 = vpop.permute.xlu1 %321  ;;  %v296_v17 = vpop.permute.xlu0 %295 }
  0xa7   : > { %v298_v18 = vsel %vm297_vm2, %v294_v15, %v296_v17  ;;  %v324_v19 = vsel %vm323_vm3, %v320_v14, %v322_v16 }
  0xa8   : > { %310 = vmatpush.bf16.msra.mxu2 %v298_v18  ;;  %336 = vmatpush.bf16.msra.mxu3 %v324_v19 }
  0xab   : > { %507 = vmatmul.msk.bf16.vlgmr.msra.gmra.mxu2 %vm252_vm0, %v292_v20  ;;  %508 = vmatmul.msk.bf16.vlgmr.msra.gmra.mxu3 %vm252_vm0, %v318_v21 }
  0xae   : > { %v287_v22 = vpop.f32.mrf.mxu1 }
  0xb6   : > { %v289_v23 = vpop.f32.mrf.mxu1 }
 0x111   : > { %v265_v24 = vpop.f32.mrf.mxu0 }
 0x112   : > { %v288_v26 = vadd.f32 %v287_v22, %v265_v24 }
 0x119   : > { %v267_v25 = vpop.f32.mrf.mxu0 }
 0x12e   : > { %v312_v27 = vpop.f32.mrf.mxu2  ;;  %v338_v28 = vpop.f32.mrf.mxu3 }
 0x12f   : > { %v316_v29 = vadd.f32 %v312_v27, %v288_v26 }
 0x131   : > { %v342_v31 = vadd.f32 %v338_v28, %v316_v29 }
 0x133   : > { %v347_v32 = vmul.f32 %v597_v30, %v342_v31 }
 0x135   : > { %348 = vadd.xlane.f32.xlu0 %v347_v32 }
 0x136   : > { %v314_v33 = vpop.f32.mrf.mxu2  ;;  %v340_v34 = vpop.f32.mrf.mxu3 }
 0x1a8   : > { %v349_v35 = vpop.xlane.xlu0 %348 }
 0x1a9   : > { %v350_v36 = vmul.f32 0.015625, %v349_v35 }
 0x1ab   : > { %v351_v37 = vsub.f32 %v342_v31, %v350_v36 }
 0x1ad   : > { %v352_v38 = vmul.f32 %v351_v37, %v351_v37 }
 0x1af   : > { %v353_v39 = vmul.f32 %v597_v30, %v352_v38 }
 0x1b1   : > { %354 = vadd.xlane.f32.xlu1 %v353_v39 }
 0x224   : > { %v355_v40 = vpop.xlane.xlu1 %354 }
 0x225   : > { %v356_v41 = vmul.f32 0.015625, %v355_v40 }
 0x227   : > { %v357_v42 = vadd.f32 1e-05, %v356_v41 }
 0x229   : > { %598 = vrsqrt.f32 %v357_v42  ;;  %vm364_vm5 = vweird.f32 %v357_v42 }
 0x22f   : > { %v599_v43 = vpop.eup %598 }
 0x230   : > { %v359_v44 = vmul.f32 %v599_v43, %v357_v42  ;;  %vm365_vm4 = vweird.f32 %v599_v43 }
 0x231   : > { %vm366_vm6 = vmor %vm364_vm5, %vm365_vm4 }
 0x232   : > { %v360_v45 = vmul.f32 %v599_v43, %v359_v44 }
 0x234   : > { %v361_v46 = vmul.f32 0.5, %v360_v45 }
 0x236   : > { %v362_v47 = vsub.f32 1.5, %v361_v46 }
 0x238   : > { %v363_v48 = vmul.f32 %v599_v43, %v362_v47 }
 0x23a   : > { %v367_v49 = vsel %vm366_vm6, %v599_v43, %v363_v48 }
 0x23b   : > { %v368_v50 = vmul.f32 %v367_v49, %v351_v37 }
 0x23d   : > { %vm369_vm7 = vcmp.gt.f32.partialorder %v368_v50, 0.0  ;;  %v370_v51 = vmul.f32 0.2, %v368_v50 }
 0x23f   : > { %v371_v52 = vsel %vm369_vm7, %v368_v50, %v370_v51 }
 0x240   : > { %372 = vst [vmem:[%s228_s29] sm:$0xff] %v371_v52 }
 0x241   : > { %687 = shalt.err (!%p684_p0)
}
 0x242   : > { %523 = dma.vmem_to_hbm [thread:$0]  (%p855_p5), %s388_s21, 128, %s390_s30, %s374_s15  }
 0x243 PF: > { %s401_s6 = sand.u32 1, %s726_s12   ;;  %p534_p3 = pnand %p485_p11, %p825_p6 }
 0x244   : > { %s402_s20 = scalar_lea.sflag [#allocation4], %s401_s6 }
 0x245   : > { %p535_p7 = pneg %p534_p3 }
 0x247   : > { %721 = dma.done.wait (%p535_p7), %s402_s20, 128  }
 0x248   : > { %723 = vsyncadd (%p535_p7), %s402_s20, 4294967168  ;;  %s20_s17 = sadd.s32 1, %s746_s17   ;;  %s946_s12 = smov %s730_s13 }
 0x249   : > { %p17_p9 = scmp.ge.s32.totalorder %s20_s17, 4   ;;  %s947_s13 = smov %s734_s14 }
 0x24a   : > { %s948_s14 = smov %s864_s18  ;;  %s949_s15 = smov %s742_s16 }
 0x24b   : > { %s950_s16 = smov %s952_s5  ;;  %19 = sbr.rel (!%p17_p9) target bundleno = 9 (0x9), region = 85 }
 0x250   :  { %408 = vsyncpa [#allocation3], 1 }
 0x251   :  { %410 = vsyncpa [#allocation3 + $0x1], 1 }
 0x252   :  { %411 = vsyncpa [#allocation6], 1 }
 0x253   :  { %412 = vsyncpa [#allocation4], 1 }
 0x254   :  { %414 = vsyncpa [#allocation4 + $0x1], 1 }

</bundles_post_ra>
